<compile_context>
chip_gen: v6e
topology: v6e:2x2x1
jax: 0.10.0
libtpu: 0.0.40
codegen_flags: <defaults>
</compile_context>

<pallas_src>
import jax
import jax.numpy as jnp
from jax.experimental import pallas as pl
from jax.experimental.pallas import tpu as pltpu

K_IN = 28 * 28      # 784
K_PAD = 896         # 7 * 128, lane-aligned K for the first matmul
H1 = 128
H2 = 64
N_OUT = 10
OUT_PAD = 128       # lane-dense output width
TB_MAX = 1024       # batch tile: fits easily in VMEM on v5e/v6e/v7x (x tile ~1.75 MiB bf16)


def _round_up(x, m):
    return (x + m - 1) // m * m


def mlp_kernel(x_ref, w1_ref, b1_ref, w2_ref, b2_ref, w3_ref, b3_ref, o_ref):
    # x_ref: (TB, 896) bf16; weights bf16; biases f32; o_ref: (TB, 128) f32
    x = x_ref[...]
    h1 = jnp.dot(x, w1_ref[...], preferred_element_type=jnp.float32) + b1_ref[...]
    h1 = jnp.maximum(h1, 0.0).astype(jnp.bfloat16)          # ReLU in f32, store bf16 for MXU
    h2 = jnp.dot(h1, w2_ref[...], preferred_element_type=jnp.float32) + b2_ref[...]
    h2 = jnp.maximum(h2, 0.0).astype(jnp.bfloat16)
    out = jnp.dot(h2, w3_ref[...], preferred_element_type=jnp.float32) + b3_ref[...]
    o_ref[...] = out                                          # lane-dense f32 store


def simple_mlp_forward(x, params):
    """x: (..., 28, 28) or (B, 784). Returns (B, 10) float32."""
    w1, b1, w2, b2, w3, b3 = params
    x2d = x.reshape(-1, K_IN)
    B = x2d.shape[0]

    # Batch tile: large for throughput, 16-aligned (bf16 sublane packing) for tiny B.
    TB = TB_MAX if B >= TB_MAX else _round_up(B, 16)
    B_pad = _round_up(B, TB)

    # Zero-padded, bf16, lane-aligned operands (padding is exact: extra rows/cols are 0).
    x_p = jnp.zeros((B_pad, K_PAD), jnp.bfloat16).at[:B, :K_IN].set(x2d.astype(jnp.bfloat16))
    w1t = jnp.zeros((K_PAD, H1), jnp.bfloat16).at[:K_IN, :].set(w1.T.astype(jnp.bfloat16))
    w2t = w2.T.astype(jnp.bfloat16)                                   # (128, 64)
    w3t = jnp.zeros((H2, OUT_PAD), jnp.bfloat16).at[:, :N_OUT].set(w3.T.astype(jnp.bfloat16))
    b1r = b1.reshape(1, H1).astype(jnp.float32)
    b2r = b2.reshape(1, H2).astype(jnp.float32)
    b3r = jnp.zeros((1, OUT_PAD), jnp.float32).at[:, :N_OUT].set(b3.astype(jnp.float32))

    grid = (B_pad // TB,)
    resident = lambda shape: pl.BlockSpec(shape, lambda i: (0, 0))   # stays in VMEM across steps

    flops = 2 * B_pad * (K_PAD * H1 + H1 * H2 + H2 * OUT_PAD)
    bytes_accessed = (
        B_pad * K_PAD * 2                         # x stream (bf16)
        + B_pad * OUT_PAD * 4                     # output writeback (f32)
        + (K_PAD * H1 + H1 * H2 + H2 * OUT_PAD) * 2  # weights (bf16)
        + (H1 + H2 + OUT_PAD) * 4                 # biases (f32)
    )

    out_pad = pl.pallas_call(
        mlp_kernel,
        out_shape=jax.ShapeDtypeStruct((B_pad, OUT_PAD), jnp.float32),
        grid=grid,
        in_specs=[
            pl.BlockSpec((TB, K_PAD), lambda i: (i, 0)),   # streamed, double-buffered
            resident((K_PAD, H1)),
            resident((1, H1)),
            resident((H1, H2)),
            resident((1, H2)),
            resident((H2, OUT_PAD)),
            resident((1, OUT_PAD)),
        ],
        out_specs=pl.BlockSpec((TB, OUT_PAD), lambda i: (i, 0)),
        compiler_params=pltpu.CompilerParams(
            dimension_semantics=("parallel",),             # megacore sharding on v7x; no-op on v5e/v6e
        ),
        cost_estimate=pl.CostEstimate(
            flops=flops, transcendentals=0, bytes_accessed=bytes_accessed),
    )(x_p, w1t, b1r, w2t, b2r, w3t, b3r)

    return out_pad[:B, :N_OUT]


def init_params(key):
    """Deterministic init matching nn.Linear shapes (PyTorch-style uniform)."""
    def linear(key, out_f, in_f):
        k1, k2 = jax.random.split(key)
        bound = 1.0 / jnp.sqrt(in_f)
        w = jax.random.uniform(k1, (out_f, in_f), jnp.float32, -bound, bound)
        b = jax.random.uniform(k2, (out_f,), jnp.float32, -bound, bound)
        return w, b

    k1, k2, k3 = jax.random.split(key, 3)
    w1, b1 = linear(k1, 128, K_IN)
    w2, b2 = linear(k2, 64, 128)
    w3, b3 = linear(k3, 10, 64)
    return (w1, b1, w2, b2, w3, b3)


def reference_forward(x, params):
    w1, b1, w2, b2, w3, b3 = params
    x2d = x.reshape(-1, K_IN)
    h1 = jax.nn.relu(x2d @ w1.T + b1)
    h2 = jax.nn.relu(h1 @ w2.T + b2)
    return h2 @ w3.T + b3


if __name__ == "__main__":
    key = jax.random.PRNGKey(0)
    kx, kp = jax.random.split(key)
    # Small MNIST-like batch: (2, 1, 28, 28) — forward flattens to (2, 784).
    x = jax.random.normal(kx, (2, 1, 28, 28), jnp.float32)
    params = init_params(kp)

    out = simple_mlp_forward(x, params)
    out = jax.block_until_ready(out)

    ref = reference_forward(x, params)
    assert out.shape == (2, 10), out.shape
    # bf16 matmul inputs -> loosen tolerance vs the f32 reference.
    assert jnp.allclose(out, ref, atol=5e-2, rtol=5e-2), "mismatch vs JAX reference"
    print("KERNEL_OK")
</pallas_src>

<mosaic_0001>
module attributes {stable_mosaic.version = 11 : i64} {
  func.func @mlp_kernel(%arg0: i32, %arg1: memref<16x896xbf16, #tpu.memory_space<vmem>>, %arg2: memref<896x128xbf16, #tpu.memory_space<vmem>>, %arg3: memref<1x128xf32, #tpu.memory_space<vmem>>, %arg4: memref<128x64xbf16, #tpu.memory_space<vmem>>, %arg5: memref<1x64xf32, #tpu.memory_space<vmem>>, %arg6: memref<64x128xbf16, #tpu.memory_space<vmem>>, %arg7: memref<1x128xf32, #tpu.memory_space<vmem>>, %arg8: memref<16x128xf32, #tpu.memory_space<vmem>>) attributes {dimension_semantics = [#tpu.dimension_semantics<parallel>], iteration_bounds = array<i64: 1>, scalar_prefetch = 0 : i64, scratch_operands = 0 : i64, tpu.core_type = #tpu.core_type<tc>, window_params = [{transform_indices = @transform_0, window_bounds = array<i64: 16, 896>}, {pipeline_mode = #tpu.pipeline_mode<synchronous>, transform_indices = @transform_1, window_bounds = array<i64: 896, 128>}, {pipeline_mode = #tpu.pipeline_mode<synchronous>, transform_indices = @transform_2, window_bounds = array<i64: 1, 128>}, {pipeline_mode = #tpu.pipeline_mode<synchronous>, transform_indices = @transform_3, window_bounds = array<i64: 128, 64>}, {pipeline_mode = #tpu.pipeline_mode<synchronous>, transform_indices = @transform_4, window_bounds = array<i64: 1, 64>}, {pipeline_mode = #tpu.pipeline_mode<synchronous>, transform_indices = @transform_5, window_bounds = array<i64: 64, 128>}, {pipeline_mode = #tpu.pipeline_mode<synchronous>, transform_indices = @transform_6, window_bounds = array<i64: 1, 128>}, {transform_indices = @transform_7, window_bounds = array<i64: 16, 128>}]} {
    %c0 = arith.constant 0 : index
    %c0_0 = arith.constant 0 : index
    %0 = vector.load %arg1[%c0, %c0_0] : memref<16x896xbf16, #tpu.memory_space<vmem>>, vector<16x896xbf16>
    %c0_1 = arith.constant 0 : index
    %c0_2 = arith.constant 0 : index
    %1 = vector.load %arg2[%c0_1, %c0_2] : memref<896x128xbf16, #tpu.memory_space<vmem>>, vector<896x128xbf16>
    %cst = arith.constant dense<0.000000e+00> : vector<16x128xf32>
    %2 = tpu.matmul %0, %1, %cst {dimension_numbers = #tpu.dot_dimension_numbers<[1], [0], [0], [1], [0, 0, 1, 1], [], []>} : vector<16x896xbf16>, vector<896x128xbf16>, vector<16x128xf32> -> vector<16x128xf32>
    %c0_3 = arith.constant 0 : index
    %c0_4 = arith.constant 0 : index
    %3 = vector.load %arg3[%c0_3, %c0_4] : memref<1x128xf32, #tpu.memory_space<vmem>>, vector<1x128xf32>
    %4 = vector.broadcast %3 : vector<1x128xf32> to vector<16x128xf32>
    %5 = arith.addf %2, %4 : vector<16x128xf32>
    %cst_5 = arith.constant 0.000000e+00 : f32
    %6 = vector.broadcast %cst_5 : f32 to vector<16x128xf32>
    %7 = arith.maximumf %5, %6 : vector<16x128xf32>
    %8 = arith.truncf %7 : vector<16x128xf32> to vector<16x128xbf16>
    %c0_6 = arith.constant 0 : index
    %c0_7 = arith.constant 0 : index
    %9 = vector.load %arg4[%c0_6, %c0_7] : memref<128x64xbf16, #tpu.memory_space<vmem>>, vector<128x64xbf16>
    %cst_8 = arith.constant dense<0.000000e+00> : vector<16x64xf32>
    %10 = tpu.matmul %8, %9, %cst_8 {dimension_numbers = #tpu.dot_dimension_numbers<[1], [0], [0], [1], [0, 0, 1, 1], [], []>} : vector<16x128xbf16>, vector<128x64xbf16>, vector<16x64xf32> -> vector<16x64xf32>
    %c0_9 = arith.constant 0 : index
    %c0_10 = arith.constant 0 : index
    %11 = vector.load %arg5[%c0_9, %c0_10] : memref<1x64xf32, #tpu.memory_space<vmem>>, vector<1x64xf32>
    %12 = vector.broadcast %11 : vector<1x64xf32> to vector<16x64xf32>
    %13 = arith.addf %10, %12 : vector<16x64xf32>
    %cst_11 = arith.constant 0.000000e+00 : f32
    %14 = vector.broadcast %cst_11 : f32 to vector<16x64xf32>
    %15 = arith.maximumf %13, %14 : vector<16x64xf32>
    %16 = arith.truncf %15 : vector<16x64xf32> to vector<16x64xbf16>
    %c0_12 = arith.constant 0 : index
    %c0_13 = arith.constant 0 : index
    %17 = vector.load %arg6[%c0_12, %c0_13] : memref<64x128xbf16, #tpu.memory_space<vmem>>, vector<64x128xbf16>
    %cst_14 = arith.constant dense<0.000000e+00> : vector<16x128xf32>
    %18 = tpu.matmul %16, %17, %cst_14 {dimension_numbers = #tpu.dot_dimension_numbers<[1], [0], [0], [1], [0, 0, 1, 1], [], []>} : vector<16x64xbf16>, vector<64x128xbf16>, vector<16x128xf32> -> vector<16x128xf32>
    %c0_15 = arith.constant 0 : index
    %c0_16 = arith.constant 0 : index
    %19 = vector.load %arg7[%c0_15, %c0_16] : memref<1x128xf32, #tpu.memory_space<vmem>>, vector<1x128xf32>
    %20 = vector.broadcast %19 : vector<1x128xf32> to vector<16x128xf32>
    %21 = arith.addf %18, %20 : vector<16x128xf32>
    %c0_17 = arith.constant 0 : index
    %c0_18 = arith.constant 0 : index
    %22 = vector.load %arg8[%c0_17, %c0_18] : memref<16x128xf32, #tpu.memory_space<vmem>>, vector<16x128xf32>
    tpu.vector_store %arg8[%c0_17, %c0_18], %21 {strides = array<i32>} : memref<16x128xf32, #tpu.memory_space<vmem>>, vector<16x128xf32>,
    return
  }
  func.func @transform_0(%arg0: i32) -> (i32, i32) {
    %c0_i32 = arith.constant 0 : i32
    %c0_i32_0 = arith.constant 0 : i32
    return %arg0, %c0_i32 : i32, i32
  }
  func.func @transform_1(%arg0: i32) -> (i32, i32) {
    %c0_i32 = arith.constant 0 : i32
    %c0_i32_0 = arith.constant 0 : i32
    %c0_i32_1 = arith.constant 0 : i32
    return %c0_i32, %c0_i32_0 : i32, i32
  }
  func.func @transform_2(%arg0: i32) -> (i32, i32) {
    %c0_i32 = arith.constant 0 : i32
    %c0_i32_0 = arith.constant 0 : i32
    %c0_i32_1 = arith.constant 0 : i32
    return %c0_i32, %c0_i32_0 : i32, i32
  }
  func.func @transform_3(%arg0: i32) -> (i32, i32) {
    %c0_i32 = arith.constant 0 : i32
    %c0_i32_0 = arith.constant 0 : i32
    %c0_i32_1 = arith.constant 0 : i32
    return %c0_i32, %c0_i32_0 : i32, i32
  }
  func.func @transform_4(%arg0: i32) -> (i32, i32) {
    %c0_i32 = arith.constant 0 : i32
    %c0_i32_0 = arith.constant 0 : i32
    %c0_i32_1 = arith.constant 0 : i32
    return %c0_i32, %c0_i32_0 : i32, i32
  }
  func.func @transform_5(%arg0: i32) -> (i32, i32) {
    %c0_i32 = arith.constant 0 : i32
    %c0_i32_0 = arith.constant 0 : i32
    %c0_i32_1 = arith.constant 0 : i32
    return %c0_i32, %c0_i32_0 : i32, i32
  }
  func.func @transform_6(%arg0: i32) -> (i32, i32) {
    %c0_i32 = arith.constant 0 : i32
    %c0_i32_0 = arith.constant 0 : i32
    %c0_i32_1 = arith.constant 0 : i32
    return %c0_i32, %c0_i32_0 : i32, i32
  }
  func.func @transform_7(%arg0: i32) -> (i32, i32) {
    %c0_i32 = arith.constant 0 : i32
    %c0_i32_0 = arith.constant 0 : i32
    return %arg0, %c0_i32 : i32, i32
  }
}

</mosaic_0001>

<bundles_post_ra>
// kernel: tpu_custom_call.1
= control target key start
LH: loop header
LB: loop body
LE: loop exit
PB: predicated region body
PF: predicated region fallthrough
CT: control target
= control target key end

     0   :  { %12 = vsyncpa [#allocation3], 0  ;;  %s1422_s0 = inlined_call_operand.vmem [shape: bf16[16,896], index: 0, kind: input, shape index: {}]   ;;  %s1423_s1 = inlined_call_operand.hbm [shape: bf16[896,128], index: 1, kind: input, shape index: {}]   ;;  %s1424_s2 = inlined_call_operand.vmem [shape: f32[1,128], index: 2, kind: input, shape index: {}]   ;;  %s1425_s3 = inlined_call_operand.vmem [shape: bf16[128,64], index: 3, kind: input, shape index: {}]   ;;  %s1426_s4 = inlined_call_operand.vmem [shape: f32[1,64], index: 4, kind: input, shape index: {}]   ;;  %s1427_s5 = inlined_call_operand.vmem [shape: bf16[64,128], index: 5, kind: input, shape index: {}]   ;;  %s1428_s6 = inlined_call_operand.vmem [shape: f32[1,128], index: 6, kind: input, shape index: {}]   ;;  %s1429_s7 = inlined_call_operand.hbm [shape: f32[16,128], index: 7, kind: output, shape index: {}]  }
   0x1   :  { %13 = vsyncpa [#allocation4], 0  ;;  %s1276_s24 = smov [#allocation2]  }
   0x2   :  { %s21_s25 = sshll.u32 %s1276_s24, 4  ;;  %s22_s25 = int_to_ptr.vmem [resolvable:$true] %s21_s25 }
   0x3   :  { %s1240_s26 = scalar_lea.vmem %s22_s25, 7168  ;;  %p1245_p1 = scmp.lt.s32.totalorder %s22_s25, %s22_s25 }
   0x4   :  { %p1241_p0 = scmp.ne.s32.totalorder %s22_s25, %s1240_s26  ;;  %p1246_p2 = scmp.lt.s32.totalorder %s1240_s26, %s1240_s26 }
   0x6   :  { %p1247_p3 = por %p1246_p2, %p1245_p1 }
   0x8   :  { %p1248_p4 = pnand %p1247_p3, %p1241_p0 }
   0xa   :  { %1251 = shalt.err (!%p1248_p4)
}
   0xb   :  { %s1277_s27 = smov 64   ;;  %s1278_s28 = smov 4  }
   0xc   :  { %27 = dma.hbm_to_vmem [thread:$0]  %s1423_s1, 7168, %s22_s25, [#allocation3], %s1277_s27, %s1277_s27, %s1278_s28  }
   0xd   :  { %1272 = dma.done.wait [#allocation3], 7168  }
   0xe   :  { %1273 = vsyncadd [#allocation3], 4294960128  ;;  %v1154_v0 = vld [vmem:[#allocation2 + $0x78] sm:$0xff]   ;;  %v1158_v4 = vld [vmem:[#allocation2 + $0x70] sm:$0xff]   ;;  %v1279_v36 = vmov 0.0   ;;  %vm1280_vm0 = vmmov 0  }
   0xf   :  { %v1155_v1 = vld [vmem:[#allocation2 + $0xf8] sm:$0xff]   ;;  %1005 = vmatprep.subr.bf16.mxu0 %v1154_v0  ;;  %v1159_v5 = vld [vmem:[#allocation2 + $0xf0] sm:$0xff]   ;;  %v1162_v8 = vld [vmem:[#allocation2 + $0x68] sm:$0xff]   ;;  %vm862_vm1 = vcmask 523264  }
  0x10   :  { %v1156_v2 = vld [vmem:[#allocation2 + $0x38] sm:$0xff]   ;;  %1027 = vmatprep.subr.bf16.mxu1 %v1155_v1  ;;  %v1160_v6 = vld [vmem:[#allocation2 + $0x30] sm:$0xff]   ;;  %v1163_v9 = vld [vmem:[#allocation2 + $0xe8] sm:$0xff]  }
  0x11   :  { %v1157_v3 = vld [vmem:[#allocation2 + $0xb8] sm:$0xff]   ;;  %1006 = vmatpush3.bf16.msra.mxu0 %v1156_v2  ;;  %v1161_v7 = vld [vmem:[#allocation2 + $0xb0] sm:$0xff]   ;;  %v1164_v10 = vld [vmem:[#allocation2 + $0x28] sm:$0xff]  }
  0x12   :  { %1028 = vmatpush3.bf16.msra.mxu1 %v1157_v3  ;;  %1007 = vmatprep.subr.bf16.mxu0 %v1158_v4  ;;  %v1165_v11 = vld [vmem:[#allocation2 + $0xa8] sm:$0xff]   ;;  %v1166_v12 = vld [vmem:[#allocation2 + $0x60] sm:$0xff]   ;;  %v1170_v16 = vld [vmem:[#allocation2 + $0x58] sm:$0xff]  }
  0x13   :  { %1029 = vmatprep.subr.bf16.mxu1 %v1159_v5  ;;  %v1167_v13 = vld [vmem:[#allocation2 + $0xe0] sm:$0xff]   ;;  %v1171_v17 = vld [vmem:[#allocation2 + $0xd8] sm:$0xff]   ;;  %v1174_v20 = vld [vmem:[#allocation2 + $0x50] sm:$0xff]  }
  0x14   :  { %v1168_v14 = vld [vmem:[#allocation2 + $0x20] sm:$0xff]   ;;  %v1172_v18 = vld [vmem:[#allocation2 + $0x18] sm:$0xff]   ;;  %v1175_v21 = vld [vmem:[#allocation2 + $0xd0] sm:$0xff]  }
  0x15   :  { %1008 = vmatpush3.bf16.msra.mxu0 %v1160_v6  ;;  %v1169_v15 = vld [vmem:[#allocation2 + $0xa0] sm:$0xff]   ;;  %v1173_v19 = vld [vmem:[#allocation2 + $0x98] sm:$0xff]   ;;  %v1176_v22 = vld [vmem:[#allocation2 + $0x10] sm:$0xff]  }
  0x16   :  { %1030 = vmatpush3.bf16.msra.mxu1 %v1161_v7  ;;  %1009 = vmatprep.subr.bf16.mxu0 %v1162_v8  ;;  %v1177_v23 = vld [vmem:[#allocation2 + $0x90] sm:$0xff]   ;;  %v1178_v24 = vld [vmem:[#allocation2 + $0x48] sm:$0xff]   ;;  %v1182_v28 = vld [vmem:[#allocation2 + $0x40] sm:$0xff]  }
  0x17   :  { %1031 = vmatprep.subr.bf16.mxu1 %v1163_v9  ;;  %v1179_v25 = vld [vmem:[#allocation2 + $0xc8] sm:$0xff]   ;;  %v1183_v29 = vld [vmem:[#allocation2 + $0xc0] sm:$0xff]   ;;  %v1192_v37 = vld [vmem:[#allocation2 + $0x178] sm:$0xff]  }
  0x18   :  { %v1180_v26 = vld [vmem:[#allocation2 + $0x8] sm:$0xff]   ;;  %v1184_v30 = vld [vmem:[#allocation2] sm:$0xff]   ;;  %v1193_v38 = vld [vmem:[#allocation2 + $0x138] sm:$0xff]  }
  0x19   :  { %1010 = vmatpush3.bf16.msra.mxu0 %v1164_v10  ;;  %v1181_v27 = vld [vmem:[#allocation2 + $0x88] sm:$0xff]   ;;  %v1185_v31 = vld [vmem:[#allocation2 + $0x80] sm:$0xff]   ;;  %v1194_v39 = vld [vmem:[#allocation2 + $0x1b8] sm:$0xff]  }
  0x1a   :  { %1032 = vmatpush3.bf16.msra.mxu1 %v1165_v11  ;;  %1011 = vmatprep.subr.bf16.mxu0 %v1166_v12  ;;  %v1186_v32 = vld [vmem:[%s1422_s0] ss:$28 sps:$4 sm:$0xff]   ;;  %v1189_v34 = vld [vmem:[%s1422_s0 + $0x8] ss:$28 sps:$4 sm:$0xff]   ;;  %v1195_v40 = vld [vmem:[#allocation2 + $0x170] sm:$0xff]  }
  0x1b   :  { %1033 = vmatprep.subr.bf16.mxu1 %v1167_v13  ;;  %v1188_v33 = vld [vmem:[%s1422_s0 + $0x4] ss:$28 sps:$4 sm:$0xff]   ;;  %v1191_v35 = vld [vmem:[%s1422_s0 + $0xc] ss:$28 sps:$4 sm:$0xff]   ;;  %v1196_v41 = vld [vmem:[#allocation2 + $0x130] sm:$0xff]  }
  0x1c   :  { %573 = vmatprep.mubr.bf16.mxu0 %v1188_v33  ;;  %614 = vmatprep.mubr.bf16.mxu1 %v1191_v35  ;;  %v1197_v42 = vld [vmem:[#allocation2 + $0x1b0] sm:$0xff]   ;;  %v1198_v43 = vld [vmem:[#allocation2 + $0x168] sm:$0xff]   ;;  %v1201_v46 = vld [vmem:[#allocation2 + $0x160] sm:$0xff]  }
  0x1d   :  { %1012 = vmatpush3.bf16.msra.mxu0 %v1168_v14  ;;  %v1199_v44 = vld [vmem:[#allocation2 + $0x128] sm:$0xff]   ;;  %v1202_v47 = vld [vmem:[#allocation2 + $0x120] sm:$0xff]   ;;  %v1204_v49 = vld [vmem:[#allocation2 + $0x158] sm:$0xff]  }
  0x1e   :  { %1034 = vmatpush3.bf16.msra.mxu1 %v1169_v15  ;;  %1013 = vmatprep.subr.bf16.mxu0 %v1170_v16  ;;  %v1200_v45 = vld [vmem:[#allocation2 + $0x1a8] sm:$0xff]   ;;  %v1203_v48 = vld [vmem:[#allocation2 + $0x1a0] sm:$0xff]   ;;  %v1205_v50 = vld [vmem:[#allocation2 + $0x118] sm:$0xff]  }
  0x1f   :  { %1035 = vmatprep.subr.bf16.mxu1 %v1171_v17  ;;  %v1206_v51 = vld [vmem:[#allocation2 + $0x198] sm:$0xff]   ;;  %v1207_v52 = vld [vmem:[#allocation2 + $0x150] sm:$0xff]   ;;  %v1210_v55 = vld [vmem:[#allocation2 + $0x148] sm:$0xff]  }
  0x20   :  { %v1208_v53 = vld [vmem:[#allocation2 + $0x110] sm:$0xff]   ;;  %v1211_v56 = vld [vmem:[#allocation2 + $0x108] sm:$0xff]   ;;  %v1213_v58 = vld [vmem:[#allocation2 + $0x140] sm:$0xff]  }
  0x21   :  { %1014 = vmatpush3.bf16.msra.mxu0 %v1172_v18  ;;  %v1209_v54 = vld [vmem:[#allocation2 + $0x190] sm:$0xff]   ;;  %v1212_v57 = vld [vmem:[#allocation2 + $0x188] sm:$0xff]   ;;  %v1214_v60 = vld [vmem:[#allocation2 + $0x100] sm:$0xff]  }
  0x22   :  { %1036 = vmatpush3.bf16.msra.mxu1 %v1173_v19  ;;  %1015 = vmatprep.subr.bf16.mxu0 %v1174_v20  ;;  %v1218_v59 = vld [vmem:[%s1422_s0 + $0x14] ss:$28 sps:$4 sm:$0xff]   ;;  %v1215_v61 = vld [vmem:[#allocation2 + $0x180] sm:$0xff]   ;;  %v1220_v0 = vld [vmem:[%s1425_s3 + $0x38] sm:$0xff]  }
  0x23   :  { %1037 = vmatprep.subr.bf16.mxu1 %v1175_v21  ;;  %v1216_v62 = vld [vmem:[%s1422_s0 + $0x10] ss:$28 sps:$4 sm:$0xff]   ;;  %v1219_v63 = vld [vmem:[%s1422_s0 + $0x18] ss:$28 sps:$4 sm:$0xff]   ;;  %v1223_v3 = vld [vmem:[%s1425_s3 + $0x20] sm:$0xff]  }
  0x24   :  { %v1221_v1 = vld [vmem:[%s1425_s3 + $0x30] sm:$0xff]   ;;  %v1222_v2 = vld [vmem:[%s1425_s3 + $0x28] sm:$0xff]   ;;  %v1224_v4 = vld [vmem:[%s1425_s3 + $0x18] sm:$0xff]  }
  0x25   :  { %1016 = vmatpush3.bf16.msra.mxu0 %v1176_v22  ;;  %v1225_v5 = vld [vmem:[%s1425_s3 + $0x10] sm:$0xff]   ;;  %v1226_v6 = vld [vmem:[%s1425_s3 + $0x8] sm:$0xff]   ;;  %v1227_v7 = vld [vmem:[%s1425_s3] sm:$0xff]  }
  0x26   :  { %1038 = vmatpush3.bf16.msra.mxu1 %v1177_v23  ;;  %1017 = vmatprep.subr.bf16.mxu0 %v1178_v24  ;;  %v1228_v8 = vld [vmem:[%s1427_s5 + $0x18] sm:$0xff]   ;;  %v926_v16 = vld [vmem:[%s1424_s2] ss:$0 sm:$0xff] }
  0x27   :  { %1039 = vmatprep.subr.bf16.mxu1 %v1179_v25 }
  0x29   :  { %1018 = vmatpush3.bf16.msra.mxu0 %v1180_v26 }
  0x2a   :  { %1040 = vmatpush3.bf16.msra.mxu1 %v1181_v27  ;;  %1019 = vmatprep.subr.bf16.mxu0 %v1182_v28 }
  0x2b   :  { %1041 = vmatprep.subr.bf16.mxu1 %v1183_v29 }
  0x2d   :  { %1020 = vmatpush3.bf16.msra.mxu0 %v1184_v30 }
  0x2e   :  { %1042 = vmatpush3.bf16.msra.mxu1 %v1185_v31  ;;  %1049 = vmatprep.subr.bf16.mxu0 %v1192_v37 }
  0x2f   :  { %1094 = vmatprep.subr.bf16.mxu1 %v1279_v36 }
  0x30   :  { %574 = vmatmul.mubr.bf16.vlgmr.msra.gmra.mxu0 %v1186_v32 }
  0x31   :  { %615 = vmatmul.mubr.bf16.vlgmr.msra.gmra.mxu1 %v1189_v34  ;;  %1050 = vmatpush3.bf16.msra.mxu0 %v1193_v38 }
  0x32   :  { %1110 = vmatprep.mubr.msk.bf16.mxu1 %vm1280_vm0, %v1279_v36  ;;  %1095 = vmatpush3.bf16.msra.mxu1 %v1194_v39 }
  0x33   :  { %1051 = vmatprep.subr.bf16.mxu0 %v1195_v40  ;;  %1096 = vmatprep.subr.bf16.mxu1 %v1279_v36 }
  0x34   :  { %655 = vmatprep.mubr.bf16.mxu0 %v1218_v59 }
  0x35   :  { %1052 = vmatpush3.bf16.msra.mxu0 %v1196_v41 }
  0x36   :  { %1097 = vmatpush3.bf16.msra.mxu1 %v1197_v42  ;;  %1053 = vmatprep.subr.bf16.mxu0 %v1198_v43 }
  0x37   :  { %1098 = vmatprep.subr.bf16.mxu1 %v1279_v36 }
  0x39   :  { %1054 = vmatpush3.bf16.msra.mxu0 %v1199_v44  ;;  %v1229_v44 = vld [vmem:[%s1427_s5 + $0x10] sm:$0xff]  }
  0x3a   :  { %1099 = vmatpush3.bf16.msra.mxu1 %v1200_v45  ;;  %1055 = vmatprep.subr.bf16.mxu0 %v1201_v46  ;;  %v1230_v45 = vld [vmem:[%s1427_s5 + $0x8] sm:$0xff]   ;;  %v1231_v46 = vld [vmem:[%s1427_s5] sm:$0xff]   ;;  %s1281_s5 = smov [#allocation5]  }
  0x3b   :  { %1100 = vmatprep.subr.bf16.mxu1 %v1279_v36 }
  0x3d   :  { %1056 = vmatpush3.bf16.msra.mxu0 %v1202_v47  ;;  %v990_v47 = vld [vmem:[%s1426_s4] ss:$0 sm:$0xff]  ;;  %s914_s4 = sshll.u32 %s1281_s5, 4  ;;  %s915_s4 = int_to_ptr.vmem [resolvable:$true] %s914_s4 }
  0x3e   :  { %1101 = vmatpush3.bf16.msra.mxu1 %v1203_v48  ;;  %1057 = vmatprep.subr.bf16.mxu0 %v1204_v49  ;;  %s1252_s23 = scalar_lea.vmem %s915_s4, 256  ;;  %p1257_p6 = scmp.lt.s32.totalorder %s915_s4, %s915_s4 }
  0x3f   :  { %1102 = vmatprep.subr.bf16.mxu1 %v1279_v36  ;;  %p1253_p5 = scmp.ne.s32.totalorder %s915_s4, %s1252_s23  ;;  %p1258_p7 = scmp.lt.s32.totalorder %s1252_s23, %s1252_s23 }
  0x41   :  { %1058 = vmatpush3.bf16.msra.mxu0 %v1205_v50  ;;  %p1259_p8 = por %p1258_p7, %p1257_p6 }
  0x42   :  { %1103 = vmatpush3.bf16.msra.mxu1 %v1206_v51  ;;  %1059 = vmatprep.subr.bf16.mxu0 %v1207_v52 }
  0x43   :  { %1104 = vmatprep.subr.bf16.mxu1 %v1279_v36  ;;  %p1260_p9 = pnand %p1259_p8, %p1253_p5 }
  0x45   :  { %1060 = vmatpush3.bf16.msra.mxu0 %v1208_v53 }
  0x46   :  { %1105 = vmatpush3.bf16.msra.mxu1 %v1209_v54  ;;  %1061 = vmatprep.subr.bf16.mxu0 %v1210_v55 }
  0x47   :  { %1106 = vmatprep.subr.bf16.mxu1 %v1279_v36 }
  0x49   :  { %1062 = vmatpush3.bf16.msra.mxu0 %v1211_v56 }
  0x4a   :  { %1107 = vmatpush3.bf16.msra.mxu1 %v1212_v57  ;;  %1063 = vmatprep.subr.bf16.mxu0 %v1213_v58 }
  0x4b   :  { %1108 = vmatprep.subr.bf16.mxu1 %v1279_v36 }
  0x4d   :  { %1064 = vmatpush3.bf16.msra.mxu0 %v1214_v60 }
  0x4e   :  { %1109 = vmatpush3.bf16.msra.mxu1 %v1215_v61  ;;  %1114 = vmatprep.subr.bf16.mxu0 %v1279_v36 }
  0x4f   :  { %1134 = vmatprep.subr.bf16.mxu1 %v1279_v36 }
  0x50   :  { %656 = vmatmul.mubr.bf16.vlgmr.msra.gmra.mxu0 %v1216_v62 }
  0x51   :  { %1111 = vmatmul.mubr.bf16.vlgmr.msra.gmra.mxu1 %v1219_v63  ;;  %1130 = vmatprep.mubr.msk.bf16.mxu0 %vm1280_vm0, %v1279_v36 }
  0x52   :  { %1142 = vmatprep.mubr.msk.bf16.mxu1 %vm1280_vm0, %v1279_v36  ;;  %1115 = vmatpush3.bf16.msra.mxu0 %v1220_v0 }
  0x53   :  { %1116 = vmatprep.subr.bf16.mxu0 %v1279_v36  ;;  %1135 = vmatpush3.bf16.msra.mxu1 %v1228_v8 }
  0x54   :  { %1136 = vmatprep.subr.bf16.mxu1 %v1279_v36 }
  0x56   :  { %1117 = vmatpush3.bf16.msra.mxu0 %v1221_v1 }
  0x57   :  { %1118 = vmatprep.subr.bf16.mxu0 %v1279_v36  ;;  %1137 = vmatpush3.bf16.msra.mxu1 %v1229_v44 }
  0x58   :  { %1138 = vmatprep.subr.bf16.mxu1 %v1279_v36 }
  0x5a   :  { %1119 = vmatpush3.bf16.msra.mxu0 %v1222_v2 }
  0x5b   :  { %1120 = vmatprep.subr.bf16.mxu0 %v1279_v36  ;;  %1139 = vmatpush3.bf16.msra.mxu1 %v1230_v45 }
  0x5c   :  { %1140 = vmatprep.subr.bf16.mxu1 %v1279_v36 }
  0x5e   :  { %1121 = vmatpush3.bf16.msra.mxu0 %v1223_v3 }
  0x5f   :  { %1122 = vmatprep.subr.bf16.mxu0 %v1279_v36  ;;  %1141 = vmatpush3.bf16.msra.mxu1 %v1231_v46 }
  0x62   :  { %1123 = vmatpush3.bf16.msra.mxu0 %v1224_v4 }
  0x63   :  { %1124 = vmatprep.subr.bf16.mxu0 %v1279_v36 }
  0x66   :  { %1125 = vmatpush3.bf16.msra.mxu0 %v1225_v5 }
  0x67   :  { %1126 = vmatprep.subr.bf16.mxu0 %v1279_v36 }
  0x6a   :  { %1127 = vmatpush3.bf16.msra.mxu0 %v1226_v6 }
  0x6b   :  { %1128 = vmatprep.subr.bf16.mxu0 %v1279_v36  ;;  %v999_v36 = vld [vmem:[%s1428_s6] ss:$0 sm:$0xff] }
  0x6e   :  { %1129 = vmatpush3.bf16.msra.mxu0 %v1227_v7 }
  0xf0   :  { %v1021_v9 = vpop.f32.mrf.mxu0 }
  0xf1   :  { %v1043_v10 = vpop.f32.mrf.mxu1 }
  0xf2   :  { %v1022_v11 = vpop.f32.mrf.mxu0 }
  0xf3   :  { %v1044_v12 = vpop.f32.mrf.mxu1  ;;  %v1023_v14 = vadd.f32 %v1022_v11, %v1021_v9 }
  0xf4   :  { %v1024_v13 = vpop.f32.mrf.mxu0  ;;  %v1045_v19 = vadd.f32 %v1044_v12, %v1043_v10 }
  0xf5   :  { %v1046_v15 = vpop.f32.mrf.mxu1  ;;  %v576_v18 = vadd.f32 %v1023_v14, %v926_v16 }
  0xf6   :  { %v1025_v17 = vpop.f32.mrf.mxu0 }
  0xf7   :  { %v1026_v20 = vadd.f32 %v1025_v17, %v1024_v13  ;;  %v1047_v21 = vpop.f32.mrf.mxu1  ;;  %v617_v25 = vadd.f32 %v1045_v19, %v576_v18 }
  0xf8   :  { %v1048_v27 = vadd.f32 %v1047_v21, %v1046_v15 }
  0xf9   :  { %v579_v26 = vadd.f32 %v1026_v20, %v926_v16 }
  0xfb   :  { %v620_v34 = vadd.f32 %v1048_v27, %v579_v26 }
 0x110   :  { %v1065_v22 = vpop.f32.mrf.mxu0 }
 0x111   :  { %v698_v23 = vpop.f32.mrf.mxu1 }
 0x112   :  { %v1066_v24 = vpop.f32.mrf.mxu0 }
 0x113   :  { %v1067_v28 = vadd.f32 %v1066_v24, %v1065_v22  ;;  %v1112_v29 = vpop.f32.mrf.mxu1 }
 0x114   :  { %v1068_v30 = vpop.f32.mrf.mxu0 }
 0x115   :  { %v658_v31 = vadd.f32 %v1067_v28, %v617_v25  ;;  %v701_v32 = vpop.f32.mrf.mxu1 }
 0x116   :  { %v1069_v33 = vpop.f32.mrf.mxu0 }
 0x117   :  { %v1070_v35 = vadd.f32 %v1069_v33, %v1068_v30  ;;  %v1113_v37 = vpop.f32.mrf.mxu1  ;;  %v699_v38 = vadd.f32 %v698_v23, %v658_v31 }
 0x119   :  { %v661_v39 = vadd.f32 %v1070_v35, %v620_v34  ;;  %v705_v41 = vmax.f32 %v699_v38, 0.0 }
 0x11b   :  { %v702_v40 = vadd.f32 %v701_v32, %v661_v39 }
 0x11d   :  { %v706_v42 = vmax.f32 %v702_v40, 0.0 }
 0x11f   :  { %v707_v43 = vpack.c.bf16 %v706_v42, %v705_v41 }
 0x121   :  { %1131 = vmatmul.mubr.bf16.vlgmr.msra.gmra.mxu0 %v707_v43 }
 0x1e1   :  { %v813_v48 = vpop.f32.mrf.mxu0 }
 0x1e2   :  { %v814_v50 = vadd.f32 %v990_v47, %v813_v48 }
 0x1e3   :  { %v1132_v49 = vpop.f32.mrf.mxu0 }
 0x1e4   :  { %v820_v54 = vmax.f32 %v814_v50, 0.0 }
 0x1e5   :  { %v816_v51 = vpop.f32.mrf.mxu0 }
 0x1e6   :  { %v817_v52 = vadd.f32 %v990_v47, %v816_v51 }
 0x1e7   :  { %v1133_v53 = vpop.f32.mrf.mxu0 }
 0x1e8   :  { %v821_v55 = vmax.f32 %v817_v52, 0.0 }
 0x1ea   :  { %v822_v56 = vpack.c.bf16 %v821_v55, %v820_v54 }
 0x1ec   :  { %1143 = vmatmul.mubr.msk.bf16.vlgmr.msra.gmra.mxu1 %vm862_vm1, %v822_v56 }
 0x2ac   :  { %v900_v57 = vpop.f32.mrf.mxu1 }
 0x2ad   :  { %v901_v58 = vadd.f32 %v999_v36, %v900_v57 }
 0x2ae   :  { %v1144_v59 = vpop.f32.mrf.mxu1 }
 0x2af   :  { %907 = vst [vmem:[#allocation5] sm:$0xff] %v901_v58 }
 0x2b0   :  { %v903_v60 = vpop.f32.mrf.mxu1 }
 0x2b1   :  { %v904_v61 = vadd.f32 %v999_v36, %v903_v60 }
 0x2b2   :  { %v1145_v62 = vpop.f32.mrf.mxu1 }
 0x2b3   :  { %908 = vst [vmem:[#allocation5 + $0x8] sm:$0xff] %v904_v61 }
 0x2b4   :  { %1263 = shalt.err (!%p1260_p9)
}
 0x2b5   :  { %s1282_s24 = smov 128   ;;  %s1283_s6 = smov 8  }
 0x2b6   :  { %920 = dma.vmem_to_hbm [thread:$0]  %s915_s4, 256, %s1429_s7, [#allocation4], %s1282_s24, %s1282_s24, %s1283_s6  }
 0x2b7   :  { %1274 = dma.done.wait [#allocation4], 256  }
 0x2b8   :  { %1275 = vsyncadd [#allocation4], 4294967040 }
 0x2b9   :  { %924 = vsyncpa [#allocation3], 1 }
 0x2ba   :  { %925 = vsyncpa [#allocation4], 1 }

</bundles_post_ra>
